<compile_context>
chip_gen: v7x
topology: tpu7x:2x2x1
jax: 0.10.0
libtpu: 0.0.40
codegen_flags: <defaults>
</compile_context>

<pallas_src>
import jax
import jax.numpy as jnp
import numpy as np
from jax.experimental import pallas as pl
from jax.experimental.pallas import tpu as pltpu


def _pos_embed_kernel(colT_ref, rowT_ref, out_ref):
    # colT_ref: (D, W)   -- col_embed weights for columns 0..W-1, transposed
    # rowT_ref: (D, H)   -- row_embed weights for rows    0..H-1, transposed
    # out_ref : (2*D, H*W), channel-major / spatial-flat:
    #     out[c,     h*W + w] = colT[c, w]   (x half, repeats over rows h)
    #     out[D + c, h*W + w] = rowT[c, h]   (y half, repeats over cols w)
    D, W = colT_ref.shape
    _, H = rowT_ref.shape

    colT = colT_ref[...]                                       # (D, W)
    rowT = rowT_ref[...]                                       # (D, H)

    # x half: colT tiled H times along the lane axis -> (D, H*W).
    out_ref[:D, :] = jnp.concatenate([colT] * H, axis=-1)

    # y half: column h of rowT broadcast across W lanes, laid out consecutively
    # along the lane axis -> (D, H*W). Static unroll over H (H is small).
    out_ref[D:, :] = jnp.concatenate(
        [jnp.broadcast_to(rowT[:, h:h + 1], (D, W)) for h in range(H)],
        axis=-1)


def position_embedding_learned(x, row_weight, col_weight):
    """Forward pass of PositionEmbeddingLearned.

    x:           (B, C, H, W)  -- only the shape is used (as in the reference)
    row_weight:  (50, D)       -- nn.Embedding(50, D).weight
    col_weight:  (50, D)
    returns:     (B, 2*D, H, W)
    """
    B, _, H, W = x.shape
    D = col_weight.shape[1]
    if H > row_weight.shape[0] or W > col_weight.shape[0]:
        raise ValueError(
            "spatial size exceeds embedding table size "
            f"(H={H}, W={W}, table={row_weight.shape[0]})")

    dtype = col_weight.dtype
    # Embedding lookup with arange(W)/arange(H) indices == a leading slice;
    # transpose the tiny tables so the feature dim lands on sublanes in-kernel.
    colT = col_weight[:W].T        # (D, W)
    rowT = row_weight[:H].T        # (D, H)

    HW = H * W
    bytes_accessed = int((D * W + D * H + 2 * D * HW) * dtype.itemsize)

    pos = pl.pallas_call(
        _pos_embed_kernel,
        out_shape=jax.ShapeDtypeStruct((2 * D, HW), dtype),
        grid=(1,),
        in_specs=[
            pl.BlockSpec((D, W), lambda i: (0, 0)),
            pl.BlockSpec((D, H), lambda i: (0, 0)),
        ],
        out_specs=pl.BlockSpec((2 * D, HW), lambda i: (0, 0)),
        compiler_params=pltpu.CompilerParams(
            dimension_semantics=("arbitrary",)),
        cost_estimate=pl.CostEstimate(
            flops=0, transcendentals=0, bytes_accessed=bytes_accessed),
    )(colT, rowT)

    # (2D, H*W) -> (2D, H, W) is a free reshape (same HBM layout),
    # then broadcast over the batch (identical for every batch element).
    pos = pos.reshape(2 * D, H, W)
    return jnp.broadcast_to(pos[None], (B, 2 * D, H, W))


def _reference(x, row_weight, col_weight):
    """Pure-JAX mirror of the PyTorch forward, for verification."""
    B, _, H, W = x.shape
    x_emb = col_weight[:W]                                    # (W, D)
    y_emb = row_weight[:H]                                    # (H, D)
    pos = jnp.concatenate(
        [jnp.broadcast_to(x_emb[None, :, :], (H, W, x_emb.shape[-1])),
         jnp.broadcast_to(y_emb[:, None, :], (H, W, y_emb.shape[-1]))],
        axis=-1)                                              # (H, W, 2D)
    pos = jnp.transpose(pos, (2, 0, 1))[None]                 # (1, 2D, H, W)
    return jnp.broadcast_to(pos, (B,) + pos.shape[1:])


if __name__ == "__main__":
    key = jax.random.PRNGKey(0)
    k_row, k_col, k_x = jax.random.split(key, 3)

    num_pos_feats = 32   # small, consistent with nn.Embedding(50, num_pos_feats)
    B, C, H, W = 2, 4, 16, 16

    # Deterministic "learned" parameters: nn.init.uniform_ -> U[0, 1)
    row_weight = jax.random.uniform(k_row, (50, num_pos_feats), dtype=jnp.float32)
    col_weight = jax.random.uniform(k_col, (50, num_pos_feats), dtype=jnp.float32)
    x = jax.random.normal(k_x, (B, C, H, W), dtype=jnp.float32)

    pos = position_embedding_learned(x, row_weight, col_weight)
    pos = jax.block_until_ready(pos)

    ref = _reference(x, row_weight, col_weight)
    np.testing.assert_allclose(np.asarray(pos), np.asarray(ref), rtol=0, atol=0)
    assert pos.shape == (B, 2 * num_pos_feats, H, W)

    print("KERNEL_OK")
</pallas_src>

<mosaic_0001>
module attributes {stable_mosaic.version = 11 : i64} {
  func.func @_pos_embed_kernel(%arg0: i32, %arg1: memref<32x16xf32, #tpu.memory_space<vmem>>, %arg2: memref<32x16xf32, #tpu.memory_space<vmem>>, %arg3: memref<64x256xf32, #tpu.memory_space<vmem>>) attributes {dimension_semantics = [#tpu.dimension_semantics<arbitrary>], iteration_bounds = array<i64: 1>, scalar_prefetch = 0 : i64, scratch_operands = 0 : i64, tpu.core_type = #tpu.core_type<tc>, window_params = [{pipeline_mode = #tpu.pipeline_mode<synchronous>, transform_indices = @transform_0, window_bounds = array<i64: 32, 16>}, {pipeline_mode = #tpu.pipeline_mode<synchronous>, transform_indices = @transform_1, window_bounds = array<i64: 32, 16>}, {pipeline_mode = #tpu.pipeline_mode<synchronous>, transform_indices = @transform_2, window_bounds = array<i64: 64, 256>}]} {
    %c0 = arith.constant 0 : index
    %c0_0 = arith.constant 0 : index
    %0 = vector.load %arg1[%c0, %c0_0] : memref<32x16xf32, #tpu.memory_space<vmem>>, vector<32x16xf32>
    %c0_1 = arith.constant 0 : index
    %c0_2 = arith.constant 0 : index
    %1 = vector.load %arg2[%c0_1, %c0_2] : memref<32x16xf32, #tpu.memory_space<vmem>>, vector<32x16xf32>
    %2 = tpu.concatenate %0, %0, %0, %0, %0, %0, %0, %0, %0, %0, %0, %0, %0, %0, %0, %0 in 1 : vector<32x16xf32>, vector<32x16xf32>, vector<32x16xf32>, vector<32x16xf32>, vector<32x16xf32>, vector<32x16xf32>, vector<32x16xf32>, vector<32x16xf32>, vector<32x16xf32>, vector<32x16xf32>, vector<32x16xf32>, vector<32x16xf32>, vector<32x16xf32>, vector<32x16xf32>, vector<32x16xf32>, vector<32x16xf32> -> vector<32x256xf32>
    %c0_3 = arith.constant 0 : index
    %c0_4 = arith.constant 0 : index
    %3 = vector.load %arg3[%c0_3, %c0_4] : memref<64x256xf32, #tpu.memory_space<vmem>>, vector<32x256xf32>
    tpu.vector_store %arg3[%c0_3, %c0_4], %2 {strides = array<i32>} : memref<64x256xf32, #tpu.memory_space<vmem>>, vector<32x256xf32>,
    %4 = vector.extract_strided_slice %1 {offsets = [0, 0], sizes = [32, 1], strides = [1, 1]} : vector<32x16xf32> to vector<32x1xf32>
    %5 = vector.shape_cast %4 : vector<32x1xf32> to vector<32x1xf32>
    %6 = vector.broadcast %5 : vector<32x1xf32> to vector<32x16xf32>
    %7 = vector.extract_strided_slice %1 {offsets = [0, 1], sizes = [32, 1], strides = [1, 1]} : vector<32x16xf32> to vector<32x1xf32>
    %8 = vector.shape_cast %7 : vector<32x1xf32> to vector<32x1xf32>
    %9 = vector.broadcast %8 : vector<32x1xf32> to vector<32x16xf32>
    %10 = vector.extract_strided_slice %1 {offsets = [0, 2], sizes = [32, 1], strides = [1, 1]} : vector<32x16xf32> to vector<32x1xf32>
    %11 = vector.shape_cast %10 : vector<32x1xf32> to vector<32x1xf32>
    %12 = vector.broadcast %11 : vector<32x1xf32> to vector<32x16xf32>
    %13 = vector.extract_strided_slice %1 {offsets = [0, 3], sizes = [32, 1], strides = [1, 1]} : vector<32x16xf32> to vector<32x1xf32>
    %14 = vector.shape_cast %13 : vector<32x1xf32> to vector<32x1xf32>
    %15 = vector.broadcast %14 : vector<32x1xf32> to vector<32x16xf32>
    %16 = vector.extract_strided_slice %1 {offsets = [0, 4], sizes = [32, 1], strides = [1, 1]} : vector<32x16xf32> to vector<32x1xf32>
    %17 = vector.shape_cast %16 : vector<32x1xf32> to vector<32x1xf32>
    %18 = vector.broadcast %17 : vector<32x1xf32> to vector<32x16xf32>
    %19 = vector.extract_strided_slice %1 {offsets = [0, 5], sizes = [32, 1], strides = [1, 1]} : vector<32x16xf32> to vector<32x1xf32>
    %20 = vector.shape_cast %19 : vector<32x1xf32> to vector<32x1xf32>
    %21 = vector.broadcast %20 : vector<32x1xf32> to vector<32x16xf32>
    %22 = vector.extract_strided_slice %1 {offsets = [0, 6], sizes = [32, 1], strides = [1, 1]} : vector<32x16xf32> to vector<32x1xf32>
    %23 = vector.shape_cast %22 : vector<32x1xf32> to vector<32x1xf32>
    %24 = vector.broadcast %23 : vector<32x1xf32> to vector<32x16xf32>
    %25 = vector.extract_strided_slice %1 {offsets = [0, 7], sizes = [32, 1], strides = [1, 1]} : vector<32x16xf32> to vector<32x1xf32>
    %26 = vector.shape_cast %25 : vector<32x1xf32> to vector<32x1xf32>
    %27 = vector.broadcast %26 : vector<32x1xf32> to vector<32x16xf32>
    %28 = vector.extract_strided_slice %1 {offsets = [0, 8], sizes = [32, 1], strides = [1, 1]} : vector<32x16xf32> to vector<32x1xf32>
    %29 = vector.shape_cast %28 : vector<32x1xf32> to vector<32x1xf32>
    %30 = vector.broadcast %29 : vector<32x1xf32> to vector<32x16xf32>
    %31 = vector.extract_strided_slice %1 {offsets = [0, 9], sizes = [32, 1], strides = [1, 1]} : vector<32x16xf32> to vector<32x1xf32>
    %32 = vector.shape_cast %31 : vector<32x1xf32> to vector<32x1xf32>
    %33 = vector.broadcast %32 : vector<32x1xf32> to vector<32x16xf32>
    %34 = vector.extract_strided_slice %1 {offsets = [0, 10], sizes = [32, 1], strides = [1, 1]} : vector<32x16xf32> to vector<32x1xf32>
    %35 = vector.shape_cast %34 : vector<32x1xf32> to vector<32x1xf32>
    %36 = vector.broadcast %35 : vector<32x1xf32> to vector<32x16xf32>
    %37 = vector.extract_strided_slice %1 {offsets = [0, 11], sizes = [32, 1], strides = [1, 1]} : vector<32x16xf32> to vector<32x1xf32>
    %38 = vector.shape_cast %37 : vector<32x1xf32> to vector<32x1xf32>
    %39 = vector.broadcast %38 : vector<32x1xf32> to vector<32x16xf32>
    %40 = vector.extract_strided_slice %1 {offsets = [0, 12], sizes = [32, 1], strides = [1, 1]} : vector<32x16xf32> to vector<32x1xf32>
    %41 = vector.shape_cast %40 : vector<32x1xf32> to vector<32x1xf32>
    %42 = vector.broadcast %41 : vector<32x1xf32> to vector<32x16xf32>
    %43 = vector.extract_strided_slice %1 {offsets = [0, 13], sizes = [32, 1], strides = [1, 1]} : vector<32x16xf32> to vector<32x1xf32>
    %44 = vector.shape_cast %43 : vector<32x1xf32> to vector<32x1xf32>
    %45 = vector.broadcast %44 : vector<32x1xf32> to vector<32x16xf32>
    %46 = vector.extract_strided_slice %1 {offsets = [0, 14], sizes = [32, 1], strides = [1, 1]} : vector<32x16xf32> to vector<32x1xf32>
    %47 = vector.shape_cast %46 : vector<32x1xf32> to vector<32x1xf32>
    %48 = vector.broadcast %47 : vector<32x1xf32> to vector<32x16xf32>
    %49 = vector.extract_strided_slice %1 {offsets = [0, 15], sizes = [32, 1], strides = [1, 1]} : vector<32x16xf32> to vector<32x1xf32>
    %50 = vector.shape_cast %49 : vector<32x1xf32> to vector<32x1xf32>
    %51 = vector.broadcast %50 : vector<32x1xf32> to vector<32x16xf32>
    %52 = tpu.concatenate %6, %9, %12, %15, %18, %21, %24, %27, %30, %33, %36, %39, %42, %45, %48, %51 in 1 : vector<32x16xf32>, vector<32x16xf32>, vector<32x16xf32>, vector<32x16xf32>, vector<32x16xf32>, vector<32x16xf32>, vector<32x16xf32>, vector<32x16xf32>, vector<32x16xf32>, vector<32x16xf32>, vector<32x16xf32>, vector<32x16xf32>, vector<32x16xf32>, vector<32x16xf32>, vector<32x16xf32>, vector<32x16xf32> -> vector<32x256xf32>
    %c32 = arith.constant 32 : index
    %c0_5 = arith.constant 0 : index
    %53 = vector.load %arg3[%c32, %c0_5] : memref<64x256xf32, #tpu.memory_space<vmem>>, vector<32x256xf32>
    tpu.vector_store %arg3[%c32, %c0_5], %52 {strides = array<i32>} : memref<64x256xf32, #tpu.memory_space<vmem>>, vector<32x256xf32>,
    return
  }
  func.func @transform_0(%arg0: i32) -> (i32, i32) {
    %c0_i32 = arith.constant 0 : i32
    %c0_i32_0 = arith.constant 0 : i32
    %c0_i32_1 = arith.constant 0 : i32
    return %c0_i32, %c0_i32_0 : i32, i32
  }
  func.func @transform_1(%arg0: i32) -> (i32, i32) {
    %c0_i32 = arith.constant 0 : i32
    %c0_i32_0 = arith.constant 0 : i32
    %c0_i32_1 = arith.constant 0 : i32
    return %c0_i32, %c0_i32_0 : i32, i32
  }
  func.func @transform_2(%arg0: i32) -> (i32, i32) {
    %c0_i32 = arith.constant 0 : i32
    %c0_i32_0 = arith.constant 0 : i32
    %c0_i32_1 = arith.constant 0 : i32
    return %c0_i32, %c0_i32_0 : i32, i32
  }
}

</mosaic_0001>

<bundles_post_ra>
// kernel: tpu_custom_call.1
= control target key start
LH: loop header
LB: loop body
LE: loop exit
PB: predicated region body
PF: predicated region fallthrough
CT: control target
= control target key end

     0   :  { %s572_s13 = smov 16   ;;  %v573_v4 = vmov 0   ;;  %s877_s0 = inlined_call_operand.vmem [shape: f32[32,16], index: 0, kind: input, shape index: {}]   ;;  %s878_s1 = inlined_call_operand.vmem [shape: f32[32,16], index: 1, kind: input, shape index: {}]   ;;  %s879_s2 = inlined_call_operand.hbm [shape: f32[64,256], index: 2, kind: output, shape index: {}]  }
   0x1   :  { %v615_v0 = vld [vmem:[%s877_s0 + $0x10] sm:$0xff]  ;;  %v620_v1 = vld [vmem:[%s877_s0] sm:$0xff]  ;;  %v629_v2 = vld [vmem:[%s877_s0 + $0x18] sm:$0xff]  ;;  %517 = vset.pattern.permute.xlu1 %v573_v4  ;;  %516 = vset.pattern.permute.xlu0 %v573_v4 }
   0x2   :  { %28 = vrot.lane.b32.xlu1 %v615_v0, %s572_s13  ;;  %24 = vrot.lane.b32.xlu0 %v620_v1, %s572_s13  ;;  %v634_v3 = vld [vmem:[%s877_s0 + $0x8] sm:$0xff] }
   0x3   :  { %7 = vsyncpa [#allocation3], 0  ;;  %s574_s18 = smov 32   ;;  %s575_s0 = smov 48   ;;  %v667_v5 = vld [vmem:[%s878_s1 + $0x8] sm:$0xff]  ;;  %v672_v6 = vld [vmem:[%s878_s1] sm:$0xff] }
   0x4   :  { %s576_s19 = smov 64   ;;  %s577_s20 = smov 80   ;;  %v679_v7 = vld [vmem:[%s878_s1 + $0x10] sm:$0xff]  ;;  %v684_v8 = vld [vmem:[%s878_s1 + $0x18] sm:$0xff]  ;;  %v580_v9 = vmov 1   ;;  %v581_v10 = vmov 2  }
   0x5   :  { %s578_s21 = smov 96   ;;  %s579_s22 = smov 112   ;;  %v582_v11 = vmov 3   ;;  %v583_v12 = vmov 4   ;;  %v584_v13 = vmov 5   ;;  %v585_v14 = vmov 6  }
   0x6   :  { %30 = vrot.lane.b32.xlu1 %v629_v2, %s572_s13  ;;  %26 = vrot.lane.b32.xlu0 %v634_v3, %s572_s13  ;;  %v586_v15 = vmov 7   ;;  %v587_v16 = vmov 8   ;;  %v588_v21 = vmov 9   ;;  %v589_v24 = vmov 10   ;;  %s595_s1 = smov [#allocation2]  }
   0x7   :  { %v590_v31 = vmov 11   ;;  %v591_v34 = vmov 12   ;;  %vm108_vm0 = vcmask 130048   ;;  %vm113_vm1 = vcmask 261120   ;;  %s480_s3 = sshll.u32 %s595_s1, 4  ;;  %s481_s3 = int_to_ptr.vmem [resolvable:$true] %s480_s3 }
   0x8   :  { %v592_v41 = vmov 13   ;;  %vm118_vm2 = vcmask 392192   ;;  %vm123_vm3 = vcmask 523264   ;;  %v593_v45 = vmov 14   ;;  %s548_s4 = scalar_lea.vmem %s481_s3, 2048  ;;  %p553_p1 = scmp.lt.s32.totalorder %s481_s3, %s481_s3 }
   0x9   :  { %vm128_vm4 = vcmask 654336   ;;  %vm133_vm5 = vcmask 785408   ;;  %vm138_vm6 = vcmask 916480   ;;  %p549_p0 = scmp.ne.s32.totalorder %s481_s3, %s548_s4  ;;  %p554_p2 = scmp.lt.s32.totalorder %s548_s4, %s548_s4 }
   0xa   :  { %38 = vrot.lane.b32.xlu1 %v634_v3, %s574_s18  ;;  %36 = vrot.lane.b32.xlu0 %v620_v1, %s574_s18 }
   0xb   :  { %p555_p3 = por %p554_p2, %p553_p1 }
   0xd   :  { %p556_p4 = pnand %p555_p3, %p549_p0 }
   0xe   :  { %42 = vrot.lane.b32.xlu1 %v629_v2, %s574_s18  ;;  %40 = vrot.lane.b32.xlu0 %v615_v0, %s574_s18 }
  0x12   :  { %50 = vrot.lane.b32.xlu1 %v634_v3, %s575_s0  ;;  %48 = vrot.lane.b32.xlu0 %v620_v1, %s575_s0 }
  0x16   :  { %54 = vrot.lane.b32.xlu1 %v629_v2, %s575_s0  ;;  %52 = vrot.lane.b32.xlu0 %v615_v0, %s575_s0 }
  0x1a   :  { %62 = vrot.lane.b32.xlu1 %v634_v3, %s576_s19  ;;  %60 = vrot.lane.b32.xlu0 %v620_v1, %s576_s19 }
  0x1e   :  { %66 = vrot.lane.b32.xlu1 %v629_v2, %s576_s19  ;;  %64 = vrot.lane.b32.xlu0 %v615_v0, %s576_s19 }
  0x22   :  { %74 = vrot.lane.b32.xlu1 %v634_v3, %s577_s20  ;;  %72 = vrot.lane.b32.xlu0 %v620_v1, %s577_s20 }
  0x26   :  { %78 = vrot.lane.b32.xlu1 %v629_v2, %s577_s20  ;;  %76 = vrot.lane.b32.xlu0 %v615_v0, %s577_s20 }
  0x2a   :  { %86 = vrot.lane.b32.xlu1 %v634_v3, %s578_s21  ;;  %84 = vrot.lane.b32.xlu0 %v620_v1, %s578_s21 }
  0x2e   :  { %90 = vrot.lane.b32.xlu1 %v629_v2, %s578_s21  ;;  %88 = vrot.lane.b32.xlu0 %v615_v0, %s578_s21 }
  0x32   :  { %98 = vrot.lane.b32.xlu1 %v634_v3, %s579_s22  ;;  %96 = vrot.lane.b32.xlu0 %v620_v1, %s579_s22 }
  0x36   :  { %102 = vrot.lane.b32.xlu1 %v629_v2, %s579_s22  ;;  %100 = vrot.lane.b32.xlu0 %v615_v0, %s579_s22 }
  0x3a   :  { %158 = vperm.xlu1 %517, %v667_v5   ;;  %153 = vperm.xlu0 %516, %v672_v6  }
  0x3e   :  { %163 = vperm.xlu1 %517, %v679_v7   ;;  %168 = vperm.xlu0 %516, %v684_v8  }
  0x42   :  { %518 = vset.pattern.permute.xlu1 %v580_v9  ;;  %519 = vset.pattern.permute.xlu0 %v580_v9 }
  0x43   :  { %172 = vperm.xlu1 %518, %v672_v6   ;;  %176 = vperm.xlu0 %519, %v667_v5  }
  0x47   :  { %180 = vperm.xlu1 %518, %v679_v7   ;;  %520 = vset.pattern.permute.xlu0 %v581_v10 }
  0x48   :  { %188 = vperm.xlu0 %520, %v672_v6  }
  0x4b   :  { %184 = vperm.xlu1 %518, %v684_v8  }
  0x4c   :  { %200 = vperm.xlu0 %520, %v684_v8  }
  0x4f   :  { %521 = vset.pattern.permute.xlu1 %v581_v10 }
  0x50   :  { %192 = vperm.xlu1 %521, %v667_v5   ;;  %523 = vset.pattern.permute.xlu0 %v582_v11 }
  0x51   :  { %208 = vperm.xlu0 %523, %v667_v5  }
  0x54   :  { %196 = vperm.xlu1 %521, %v679_v7  }
  0x55   :  { %524 = vset.pattern.permute.xlu0 %v583_v12 }
  0x56   :  { %220 = vperm.xlu0 %524, %v672_v6  }
  0x58   :  { %522 = vset.pattern.permute.xlu1 %v582_v11 }
  0x59   :  { %204 = vperm.xlu1 %522, %v672_v6  }
  0x5a   :  { %232 = vperm.xlu0 %524, %v684_v8  }
  0x5d   :  { %212 = vperm.xlu1 %522, %v679_v7  }
  0x5e   :  { %527 = vset.pattern.permute.xlu0 %v584_v13 }
  0x5f   :  { %240 = vperm.xlu0 %527, %v667_v5  }
  0x61   :  { %216 = vperm.xlu1 %522, %v684_v8  }
  0x63   :  { %528 = vset.pattern.permute.xlu0 %v585_v14 }
  0x64   :  { %252 = vperm.xlu0 %528, %v672_v6  }
  0x65   :  { %525 = vset.pattern.permute.xlu1 %v583_v12 }
  0x66   :  { %224 = vperm.xlu1 %525, %v667_v5  }
  0x68   :  { %264 = vperm.xlu0 %528, %v684_v8  }
  0x6a   :  { %228 = vperm.xlu1 %525, %v679_v7  }
  0x6c   :  { %531 = vset.pattern.permute.xlu0 %v586_v15 }
  0x6d   :  { %272 = vperm.xlu0 %531, %v667_v5  }
  0x6e   :  { %526 = vset.pattern.permute.xlu1 %v584_v13 }
  0x6f   :  { %236 = vperm.xlu1 %526, %v672_v6  }
  0x71   :  { %532 = vset.pattern.permute.xlu0 %v587_v16 }
  0x72   :  { %284 = vperm.xlu0 %532, %v672_v6  }
  0x73   :  { %244 = vperm.xlu1 %526, %v679_v7  }
  0x74   :  { %v711_v17 = vpop.permute.xlu1 %28  ;;  %v25_v18 = vpop.permute.xlu0 %24 }
  0x75   :  { %v109_v37 = vsel %vm108_vm0, %v620_v1, %v25_v18  ;;  %v111_v57 = vsel %vm108_vm0, %v615_v0, %v711_v17 }
  0x76   :  { %296 = vperm.xlu0 %532, %v684_v8  }
  0x77   :  { %248 = vperm.xlu1 %526, %v684_v8  }
  0x78   :  { %v715_v19 = vpop.permute.xlu1 %30  ;;  %v27_v20 = vpop.permute.xlu0 %26 }
  0x79   :  { %v110_v49 = vsel %vm108_vm0, %v634_v3, %v27_v20  ;;  %v112_v58 = vsel %vm108_vm0, %v629_v2, %v715_v19  ;;  %v594_v3 = vmov 15  }
  0x7a   :  { %535 = vset.pattern.permute.xlu0 %v588_v21 }
  0x7b   :  { %529 = vset.pattern.permute.xlu1 %v585_v14  ;;  %304 = vperm.xlu0 %535, %v667_v5  }
  0x7c   :  { %256 = vperm.xlu1 %529, %v667_v5   ;;  %v39_v22 = vpop.permute.xlu1 %38  ;;  %v37_v23 = vpop.permute.xlu0 %36 }
  0x7d   :  { %v114_v40 = vsel %vm113_vm1, %v109_v37, %v37_v23  ;;  %v115_v51 = vsel %vm113_vm1, %v110_v49, %v39_v22 }
  0x7f   :  { %536 = vset.pattern.permute.xlu0 %v589_v24 }
  0x80   :  { %260 = vperm.xlu1 %529, %v679_v7   ;;  %v721_v25 = vpop.permute.xlu1 %42  ;;  %v723_v26 = vpop.permute.xlu0 %40  ;;  %316 = vperm.xlu0 %536, %v672_v6  }
  0x81   :  { %v117_v60 = vsel %vm113_vm1, %v112_v58, %v721_v25  ;;  %v116_v61 = vsel %vm113_vm1, %v111_v57, %v723_v26 }
  0x84   :  { %530 = vset.pattern.permute.xlu1 %v586_v15  ;;  %v51_v27 = vpop.permute.xlu1 %50  ;;  %v49_v28 = vpop.permute.xlu0 %48  ;;  %328 = vperm.xlu0 %536, %v684_v8  }
  0x85   :  { %268 = vperm.xlu1 %530, %v672_v6   ;;  %v119_v44 = vsel %vm118_vm2, %v114_v40, %v49_v28  ;;  %v120_v54 = vsel %vm118_vm2, %v115_v51, %v51_v27 }
  0x88   :  { %v728_v29 = vpop.permute.xlu1 %54  ;;  %v730_v30 = vpop.permute.xlu0 %52  ;;  %539 = vset.pattern.permute.xlu0 %v590_v31 }
  0x89   :  { %276 = vperm.xlu1 %530, %v679_v7   ;;  %336 = vperm.xlu0 %539, %v667_v5   ;;  %v122_v0 = vsel %vm118_vm2, %v117_v60, %v728_v29  ;;  %v121_v2 = vsel %vm118_vm2, %v116_v61, %v730_v30 }
  0x8c   :  { %v63_v32 = vpop.permute.xlu1 %62  ;;  %v61_v33 = vpop.permute.xlu0 %60 }
  0x8d   :  { %280 = vperm.xlu1 %530, %v684_v8   ;;  %540 = vset.pattern.permute.xlu0 %v591_v34  ;;  %v124_v46 = vsel %vm123_vm3, %v119_v44, %v61_v33  ;;  %v125_v55 = vsel %vm123_vm3, %v120_v54, %v63_v32 }
  0x8e   :  { %348 = vperm.xlu0 %540, %v672_v6  }
  0x90   :  { %v67_v35 = vpop.permute.xlu1 %66  ;;  %v65_v36 = vpop.permute.xlu0 %64 }
  0x91   :  { %533 = vset.pattern.permute.xlu1 %v587_v16  ;;  %v127_v10 = vsel %vm123_vm3, %v122_v0, %v67_v35  ;;  %v126_v11 = vsel %vm123_vm3, %v121_v2, %v65_v36 }
  0x92   :  { %288 = vperm.xlu1 %533, %v667_v5   ;;  %360 = vperm.xlu0 %540, %v684_v8  }
  0x94   :  { %v75_v38 = vpop.permute.xlu1 %74  ;;  %v73_v39 = vpop.permute.xlu0 %72 }
  0x95   :  { %v129_v50 = vsel %vm128_vm4, %v124_v46, %v73_v39  ;;  %v130_v59 = vsel %vm128_vm4, %v125_v55, %v75_v38 }
  0x96   :  { %292 = vperm.xlu1 %533, %v679_v7   ;;  %543 = vset.pattern.permute.xlu0 %v592_v41 }
  0x97   :  { %368 = vperm.xlu0 %543, %v667_v5  }
  0x98   :  { %v79_v42 = vpop.permute.xlu1 %78  ;;  %v77_v43 = vpop.permute.xlu0 %76 }
  0x99   :  { %v132_v12 = vsel %vm128_vm4, %v127_v10, %v79_v42  ;;  %v131_v13 = vsel %vm128_vm4, %v126_v11, %v77_v43 }
  0x9a   :  { %534 = vset.pattern.permute.xlu1 %v588_v21 }
  0x9b   :  { %300 = vperm.xlu1 %534, %v672_v6   ;;  %544 = vset.pattern.permute.xlu0 %v593_v45 }
  0x9c   :  { %v87_v47 = vpop.permute.xlu1 %86  ;;  %v85_v48 = vpop.permute.xlu0 %84  ;;  %380 = vperm.xlu0 %544, %v672_v6  }
  0x9d   :  { %v134_v56 = vsel %vm133_vm5, %v129_v50, %v85_v48  ;;  %v135_v62 = vsel %vm133_vm5, %v130_v59, %v87_v47 }
  0x9f   :  { %308 = vperm.xlu1 %534, %v679_v7  }
  0xa0   :  { %v91_v52 = vpop.permute.xlu1 %90  ;;  %v89_v53 = vpop.permute.xlu0 %88  ;;  %392 = vperm.xlu0 %544, %v684_v8  }
  0xa1   :  { %v137_v14 = vsel %vm133_vm5, %v132_v12, %v91_v52  ;;  %v136_v15 = vsel %vm133_vm5, %v131_v13, %v89_v53 }
  0xa3   :  { %312 = vperm.xlu1 %534, %v684_v8  }
  0xa4   :  { %v99_v63 = vpop.permute.xlu1 %98  ;;  %v97_v1 = vpop.permute.xlu0 %96  ;;  %547 = vset.pattern.permute.xlu0 %v594_v3 }
  0xa5   :  { %v140_v4 = vsel %vm138_vm6, %v135_v62, %v99_v63  ;;  %v139_v9 = vsel %vm138_vm6, %v134_v56, %v97_v1  ;;  %400 = vperm.xlu0 %547, %v667_v5  }
  0xa6   :  { %145 = vst [vmem:[#allocation2 + $0x10] sm:$0xff] %v140_v4  ;;  %146 = vst [vmem:[#allocation2 + $0x18] sm:$0xff] %v140_v4 }
  0xa7   :  { %143 = vst [vmem:[#allocation2] sm:$0xff] %v139_v9  ;;  %144 = vst [vmem:[#allocation2 + $0x8] sm:$0xff] %v139_v9  ;;  %537 = vset.pattern.permute.xlu1 %v589_v24 }
  0xa8   :  { %320 = vperm.xlu1 %537, %v667_v5   ;;  %v103_v16 = vpop.permute.xlu1 %102  ;;  %v101_v17 = vpop.permute.xlu0 %100 }
  0xa9   :  { %v142_v18 = vsel %vm138_vm6, %v137_v14, %v103_v16  ;;  %v141_v19 = vsel %vm138_vm6, %v136_v15, %v101_v17 }
  0xaa   :  { %149 = vst [vmem:[#allocation2 + $0x30] sm:$0xff] %v142_v18  ;;  %150 = vst [vmem:[#allocation2 + $0x38] sm:$0xff] %v142_v18 }
  0xab   :  { %147 = vst [vmem:[#allocation2 + $0x20] sm:$0xff] %v141_v19  ;;  %148 = vst [vmem:[#allocation2 + $0x28] sm:$0xff] %v141_v19 }
  0xac   :  { %324 = vperm.xlu1 %537, %v679_v7  }
  0xb0   :  { %538 = vset.pattern.permute.xlu1 %v590_v31 }
  0xb1   :  { %332 = vperm.xlu1 %538, %v672_v6  }
  0xb5   :  { %340 = vperm.xlu1 %538, %v679_v7  }
  0xb9   :  { %344 = vperm.xlu1 %538, %v684_v8   ;;  %v159_v20 = vpop.permute.xlu1 %158  ;;  %v154_v22 = vpop.permute.xlu0 %153 }
  0xbd   :  { %541 = vset.pattern.permute.xlu1 %v591_v34  ;;  %v164_v21 = vpop.permute.xlu1 %163  ;;  %v169_v24 = vpop.permute.xlu0 %168 }
  0xbe   :  { %352 = vperm.xlu1 %541, %v667_v5  }
  0xc2   :  { %356 = vperm.xlu1 %541, %v679_v7   ;;  %v173_v23 = vpop.permute.xlu1 %172  ;;  %v177_v27 = vpop.permute.xlu0 %176 }
  0xc3   :  { %v412_v43 = vsel %vm108_vm0, %v159_v20, %v177_v27 }
  0xc6   :  { %542 = vset.pattern.permute.xlu1 %v592_v41  ;;  %v181_v25 = vpop.permute.xlu1 %180 }
  0xc7   :  { %364 = vperm.xlu1 %542, %v672_v6   ;;  %v189_v29 = vpop.permute.xlu0 %188  ;;  %v413_v58 = vsel %vm108_vm0, %v164_v21, %v181_v25 }
  0xca   :  { %v185_v26 = vpop.permute.xlu1 %184 }
  0xcb   :  { %372 = vperm.xlu1 %542, %v679_v7   ;;  %v201_v31 = vpop.permute.xlu0 %200  ;;  %v414_v56 = vsel %vm108_vm0, %v169_v24, %v185_v26 }
  0xcc   :  { %v418_v59 = vsel %vm113_vm1, %v414_v56, %v201_v31 }
  0xcf   :  { %376 = vperm.xlu1 %542, %v684_v8   ;;  %v193_v28 = vpop.permute.xlu1 %192 }
  0xd0   :  { %v209_v34 = vpop.permute.xlu0 %208  ;;  %v416_v44 = vsel %vm113_vm1, %v412_v43, %v193_v28 }
  0xd1   :  { %v420_v46 = vsel %vm118_vm2, %v416_v44, %v209_v34 }
  0xd3   :  { %545 = vset.pattern.permute.xlu1 %v593_v45  ;;  %v197_v30 = vpop.permute.xlu1 %196 }
  0xd4   :  { %384 = vperm.xlu1 %545, %v667_v5   ;;  %v417_v60 = vsel %vm113_vm1, %v413_v58, %v197_v30 }
  0xd5   :  { %v221_v36 = vpop.permute.xlu0 %220 }
  0xd8   :  { %388 = vperm.xlu1 %545, %v679_v7   ;;  %v205_v32 = vpop.permute.xlu1 %204 }
  0xd9   :  { %v233_v38 = vpop.permute.xlu0 %232 }
  0xdc   :  { %546 = vset.pattern.permute.xlu1 %v594_v3  ;;  %v213_v33 = vpop.permute.xlu1 %212 }
  0xdd   :  { %396 = vperm.xlu1 %546, %v672_v6   ;;  %v421_v63 = vsel %vm118_vm2, %v417_v60, %v213_v33 }
  0xde   :  { %v241_v40 = vpop.permute.xlu0 %240 }
  0xe0   :  { %v217_v35 = vpop.permute.xlu1 %216 }
  0xe1   :  { %404 = vperm.xlu1 %546, %v679_v7   ;;  %v422_v1 = vsel %vm118_vm2, %v418_v59, %v217_v35 }
  0xe2   :  { %v426_v4 = vsel %vm123_vm3, %v422_v1, %v233_v38 }
  0xe3   :  { %v253_v41 = vpop.permute.xlu0 %252 }
  0xe5   :  { %408 = vperm.xlu1 %546, %v684_v8   ;;  %v225_v37 = vpop.permute.xlu1 %224  ;;  %v411_v8 = vsel %vm108_vm0, %v154_v22, %v173_v23 }
  0xe6   :  { %v424_v7 = vsel %vm123_vm3, %v420_v46, %v225_v37  ;;  %v415_v50 = vsel %vm113_vm1, %v411_v8, %v189_v29 }
  0xe7   :  { %v265_v45 = vpop.permute.xlu0 %264  ;;  %v428_v48 = vsel %vm128_vm4, %v424_v7, %v241_v40  ;;  %v419_v52 = vsel %vm118_vm2, %v415_v50, %v205_v32 }
  0xe8   :  { %v423_v55 = vsel %vm123_vm3, %v419_v52, %v221_v36 }
  0xe9   :  { %v229_v39 = vpop.permute.xlu1 %228 }
  0xea   :  { %v425_v0 = vsel %vm123_vm3, %v421_v63, %v229_v39 }
  0xec   :  { %v273_v47 = vpop.permute.xlu0 %272 }
  0xee   :  { %v237_v5 = vpop.permute.xlu1 %236 }
  0xef   :  { %v427_v57 = vsel %vm128_vm4, %v423_v55, %v237_v5 }
  0xf0   :  { %v431_v61 = vsel %vm133_vm5, %v427_v57, %v253_v41 }
  0xf1   :  { %v285_v19 = vpop.permute.xlu0 %284 }
  0xf2   :  { %v245_v42 = vpop.permute.xlu1 %244 }
  0xf3   :  { %v429_v2 = vsel %vm128_vm4, %v425_v0, %v245_v42 }
  0xf5   :  { %v297_v21 = vpop.permute.xlu0 %296 }
  0xf6   :  { %v249_v6 = vpop.permute.xlu1 %248 }
  0xf7   :  { %v430_v11 = vsel %vm128_vm4, %v426_v4, %v249_v6 }
  0xf8   :  { %v434_v13 = vsel %vm133_vm5, %v430_v11, %v265_v45 }
  0xfa   :  { %v305_v24 = vpop.permute.xlu0 %304 }
  0xfb   :  { %v257_v49 = vpop.permute.xlu1 %256 }
  0xfc   :  { %v432_v51 = vsel %vm133_vm5, %v428_v48, %v257_v49 }
  0xfd   :  { %v436_v53 = vsel %vm138_vm6, %v432_v51, %v273_v47 }
  0xfe   :  { %469 = vst [vmem:[#allocation2 + $0x50] sm:$0xff] %v436_v53 }
  0xff   :  { %v261_v54 = vpop.permute.xlu1 %260  ;;  %v317_v26 = vpop.permute.xlu0 %316 }
 0x100   :  { %v433_v9 = vsel %vm133_vm5, %v429_v2, %v261_v54 }
 0x103   :  { %v329_v27 = vpop.permute.xlu0 %328 }
 0x104   :  { %v269_v62 = vpop.permute.xlu1 %268 }
 0x105   :  { %v435_v3 = vsel %vm138_vm6, %v431_v61, %v269_v62 }
 0x106   :  { %467 = vst [vmem:[#allocation2 + $0x40] sm:$0xff] %v435_v3 }
 0x108   :  { %v277_v10 = vpop.permute.xlu1 %276  ;;  %v337_v30 = vpop.permute.xlu0 %336 }
 0x109   :  { %v437_v12 = vsel %vm138_vm6, %v433_v9, %v277_v10 }
 0x10a   :  { %471 = vst [vmem:[#allocation2 + $0x60] sm:$0xff] %v437_v12 }
 0x10c   :  { %v281_v14 = vpop.permute.xlu1 %280 }
 0x10d   :  { %v438_v15 = vsel %vm138_vm6, %v434_v13, %v281_v14  ;;  %v349_v32 = vpop.permute.xlu0 %348 }
 0x10e   :  { %473 = vst [vmem:[#allocation2 + $0x70] sm:$0xff] %v438_v15 }
 0x111   :  { %v289_v16 = vpop.permute.xlu1 %288  ;;  %v361_v34 = vpop.permute.xlu0 %360 }
 0x112   :  { %v440_v40 = vsel %vm108_vm0, %v289_v16, %v305_v24 }
 0x115   :  { %v293_v17 = vpop.permute.xlu1 %292 }
 0x116   :  { %v369_v36 = vpop.permute.xlu0 %368 }
 0x11a   :  { %v301_v18 = vpop.permute.xlu1 %300 }
 0x11b   :  { %v381_v38 = vpop.permute.xlu0 %380  ;;  %v439_v45 = vsel %vm108_vm0, %v285_v19, %v301_v18 }
 0x11c   :  { %v443_v47 = vsel %vm113_vm1, %v439_v45, %v317_v26 }
 0x11e   :  { %v309_v20 = vpop.permute.xlu1 %308 }
 0x11f   :  { %v393_v41 = vpop.permute.xlu0 %392  ;;  %v441_v54 = vsel %vm108_vm0, %v293_v17, %v309_v20 }
 0x122   :  { %v313_v22 = vpop.permute.xlu1 %312 }
 0x123   :  { %v442_v52 = vsel %vm108_vm0, %v297_v21, %v313_v22 }
 0x124   :  { %v401_v6 = vpop.permute.xlu0 %400  ;;  %v446_v55 = vsel %vm113_vm1, %v442_v52, %v329_v27 }
 0x127   :  { %v321_v23 = vpop.permute.xlu1 %320 }
 0x128   :  { %v444_v5 = vsel %vm113_vm1, %v440_v40, %v321_v23 }
 0x129   :  { %v448_v43 = vsel %vm118_vm2, %v444_v5, %v337_v30 }
 0x12b   :  { %v325_v25 = vpop.permute.xlu1 %324 }
 0x12c   :  { %v445_v56 = vsel %vm113_vm1, %v441_v54, %v325_v25 }
 0x130   :  { %v333_v28 = vpop.permute.xlu1 %332 }
 0x131   :  { %v447_v48 = vsel %vm118_vm2, %v443_v47, %v333_v28 }
 0x132   :  { %v451_v51 = vsel %vm123_vm3, %v447_v48, %v349_v32 }
 0x134   :  { %v341_v29 = vpop.permute.xlu1 %340 }
 0x135   :  { %v449_v59 = vsel %vm118_vm2, %v445_v56, %v341_v29 }
 0x138   :  { %v345_v31 = vpop.permute.xlu1 %344 }
 0x139   :  { %v450_v60 = vsel %vm118_vm2, %v446_v55, %v345_v31 }
 0x13a   :  { %v454_v1 = vsel %vm123_vm3, %v450_v60, %v361_v34 }
 0x13d   :  { %v353_v33 = vpop.permute.xlu1 %352 }
 0x13e   :  { %v452_v44 = vsel %vm123_vm3, %v448_v43, %v353_v33 }
 0x13f   :  { %v456_v46 = vsel %vm128_vm4, %v452_v44, %v369_v36 }
 0x141   :  { %v357_v35 = vpop.permute.xlu1 %356 }
 0x142   :  { %v453_v62 = vsel %vm123_vm3, %v449_v59, %v357_v35 }
 0x146   :  { %v365_v37 = vpop.permute.xlu1 %364 }
 0x147   :  { %v455_v53 = vsel %vm128_vm4, %v451_v51, %v365_v37 }
 0x148   :  { %v459_v57 = vsel %vm133_vm5, %v455_v53, %v381_v38 }
 0x14a   :  { %v373_v39 = vpop.permute.xlu1 %372 }
 0x14b   :  { %v457_v63 = vsel %vm128_vm4, %v453_v62, %v373_v39 }
 0x14e   :  { %v377_v42 = vpop.permute.xlu1 %376 }
 0x14f   :  { %v458_v2 = vsel %vm128_vm4, %v454_v1, %v377_v42 }
 0x150   :  { %v462_v9 = vsel %vm133_vm5, %v458_v2, %v393_v41 }
 0x153   :  { %v385_v7 = vpop.permute.xlu1 %384 }
 0x154   :  { %v460_v8 = vsel %vm133_vm5, %v456_v46, %v385_v7 }
 0x155   :  { %v464_v49 = vsel %vm138_vm6, %v460_v8, %v401_v6 }
 0x156   :  { %470 = vst [vmem:[#allocation2 + $0x58] sm:$0xff] %v464_v49 }
 0x157   :  { %v389_v50 = vpop.permute.xlu1 %388 }
 0x158   :  { %v461_v3 = vsel %vm133_vm5, %v457_v63, %v389_v50 }
 0x15c   :  { %v397_v58 = vpop.permute.xlu1 %396 }
 0x15d   :  { %v463_v61 = vsel %vm138_vm6, %v459_v57, %v397_v58 }
 0x15e   :  { %468 = vst [vmem:[#allocation2 + $0x48] sm:$0xff] %v463_v61 }
 0x160   :  { %v405_v0 = vpop.permute.xlu1 %404 }
 0x161   :  { %v465_v4 = vsel %vm138_vm6, %v461_v3, %v405_v0 }
 0x162   :  { %472 = vst [vmem:[#allocation2 + $0x68] sm:$0xff] %v465_v4 }
 0x164   :  { %v409_v10 = vpop.permute.xlu1 %408 }
 0x165   :  { %v466_v11 = vsel %vm138_vm6, %v462_v9, %v409_v10 }
 0x166   :  { %474 = vst [vmem:[#allocation2 + $0x78] sm:$0xff] %v466_v11 }
 0x167   :  { %559 = shalt.err (!%p556_p4)
}
 0x168   :  { %s560_s7 = scalar_lea.hbm %s879_s2, 2048 }
 0x169   :  { %p561_p5 = scmp.ne.s32.totalorder %s879_s2, %s560_s7  ;;  %p564_p6 = scmp.lt.u32.totalorder %s560_s7, %s879_s2 }
 0x16b   :  { %p566_p7 = pnand %p564_p6, %p561_p5 }
 0x16d   :  { %569 = shalt.err (!%p566_p7)
}
 0x16e   :  { %s596_s12 = smov 256  }
 0x16f   :  { %486 = dma.vmem_to_hbm [thread:$0]  %s481_s3, 2048, %s879_s2, [#allocation3], %s596_s12, %s596_s12, %s572_s13  }
 0x170   :  { %570 = dma.done.wait [#allocation3], 2048  }
 0x171   :  { %571 = vsyncadd [#allocation3], 4294965248 }
 0x172   :  { %490 = vsyncpa [#allocation3], 1 }

</bundles_post_ra>
